<compile_context>
chip_gen: v7x
topology: tpu7x:2x2x1
jax: 0.10.0
libtpu: 0.0.40
codegen_flags: <defaults>
</compile_context>

<pallas_src>
import functools

import jax
import jax.numpy as jnp
from jax import lax
from jax.experimental import pallas as pl
from jax.experimental.pallas import tpu as pltpu

_LANES = 128


def _is_small_integer(v, tol=1e-12, max_int=64):
    vi = int(round(float(v)))
    return (abs(float(v) - vi) < tol) and (1 <= vi <= max_int)


def _int_pow(x, n):
    """x ** n for integer n >= 1 via a short VALU multiply chain."""
    result = None
    base = x
    while n:
        if n & 1:
            result = base if result is None else result * base
        n >>= 1
        if n:
            base = base * base
    return result


def _pow_positive(x, p):
    """x ** p for x > 0.

    Integer p  -> VPU multiply chain (0 EUP ops/elem).
    Half-int p -> integer chain + one sqrt (1 EUP op/elem).
    Otherwise  -> exp(p*log(x)) (2 EUP ops/elem; the EUP roofline for
                  fractional p on v6e/v7x).
    """
    pf = float(p)
    if _is_small_integer(pf):
        return _int_pow(x, int(round(pf)))
    if _is_small_integer(2.0 * pf):
        n = int(round(pf - 0.5))
        r = jnp.sqrt(x)
        return r if n == 0 else _int_pow(x, n) * r
    return jnp.exp(jnp.float32(pf) * jnp.log(x))


def _row_sums_lane_major(x_ref, p, eps):
    """Per-row sum of clamp(x, eps)**p over HW, returned as a (1, TM) slab.

    clamp/pow/accumulate are fused per 128-lane slab so only a (TM, 128) f32
    partial (plus one slab) is live at a time.  The final reduce is one (or
    two, if HW % 128 != 0) tiny ones(1, K<=128) MXU contractions, which lands
    the result lane-major for lane-dense output stores.
    """
    tm, hw = x_ref.shape
    eps_f = jnp.float32(eps)

    def pow_slab(lo, width):
        slab = x_ref[:, lo:lo + width].astype(jnp.float32)
        return _pow_positive(jnp.maximum(slab, eps_f), p)

    n_full = hw // _LANES
    rem = hw - n_full * _LANES

    parts = []
    if n_full:
        acc = pow_slab(0, _LANES)
        if n_full > 8:
            # Keep code size bounded for large HW; slab offsets stay 128-aligned.
            def body(c, a):
                off = pl.multiple_of(c * _LANES, _LANES)
                slab = x_ref[:, pl.ds(off, _LANES)].astype(jnp.float32)
                return a + _pow_positive(jnp.maximum(slab, eps_f), p)
            acc = lax.fori_loop(1, n_full, body, acc)
        else:
            for c in range(1, n_full):
                acc = acc + pow_slab(c * _LANES, _LANES)
        parts.append((acc, _LANES))
    if rem:
        parts.append((pow_slab(n_full * _LANES, rem), rem))

    s = None
    for arr, k in parts:
        ones = jnp.ones((1, k), dtype=jnp.float32)
        # K <= 128 here, so HIGHEST precision is nearly free (unlike the old
        # K=HW contraction) while keeping the row sum f32-accurate.
        d = lax.dot_general(
            ones, arr,
            dimension_numbers=(((1,), (1,)), ((), ())),
            preferred_element_type=jnp.float32,
            precision=lax.Precision.HIGHEST,
        )
        s = d if s is None else s + d
    return s  # (1, tm)


def _gemp_kernel(x_ref, o_ref, *, p, eps, inv_hw, total_rows):
    tm = x_ref.shape[0]
    s = _row_sums_lane_major(x_ref, p, eps)            # (1, tm) lane-major
    m = s * jnp.float32(inv_hw)                        # mean over H*W
    # m ** (1/p): one exp/log per row (negligible).
    # NOTE: for very small eps / large p, eps**p can underflow f32 to 0; the
    # result then degrades exactly like the reference (0 ** (1/p) == 0).
    y = jnp.exp(jnp.float32(1.0 / p) * jnp.log(m))
    if total_rows is not None:
        # Ragged last block: rows beyond M read unspecified data.  Their
        # results are sliced off by the wrapper; zero them here so discarded
        # lanes stay finite/deterministic (keeps NaN-checkers quiet).
        rows = pl.program_id(0) * tm + lax.broadcasted_iota(
            jnp.int32, (1, tm), 1)
        y = jnp.where(rows < total_rows, y, jnp.float32(0.0))
    o_ref[...] = y.reshape(o_ref.shape).astype(o_ref.dtype)


def _generation_hints():
    """(target_block_bytes, min_block_bytes, num_cores) per TPU generation."""
    target, min_block, num_cores = 2 << 20, 1 << 20, 1
    is_v7x = False
    try:
        info = pltpu.get_tpu_info()
        vmem = getattr(info, "vmem_capacity_bytes", None)
        if vmem is not None and vmem <= 64 * 1024 * 1024:
            is_v7x = True   # v7x signature: 64 MiB VMEM/TC, ~3.2 TB/s, 2 TCs
    except Exception:
        pass
    if not is_v7x:
        try:
            kind = jax.devices()[0].device_kind.lower()
            is_v7x = ("v7" in kind) or ("7x" in kind)
        except Exception:
            pass
    if is_v7x:
        target, min_block, num_cores = 4 << 20, 2 << 20, 2
    return target, min_block, num_cores


def _choose_row_tile(m, hw, itemsize, target_block_bytes, min_block_bytes,
                     num_cores):
    """Pick the row tile TM.

    Targets `target_block_bytes` of input per grid step (>=85% of HBM roofline
    needs >=1 MiB blocks; v7x's 3.2 TB/s wants 2-4 MiB), rounded to a multiple
    of 128 rows when possible (whole-vreg arithmetic + lane-dense output).
    Only shrinks below the target to (a) not exceed the row count, (b) give
    the pipeline >= ~4 steps, or (c) balance blocks across v7x's two
    TensorCores -- and never below `min_block_bytes`.
    """
    row_bytes = max(1, hw * itemsize)

    def _round_rows(r):
        if r >= 128:
            return (r // 128) * 128
        return max(8, (r // 8) * 8)

    tm = _round_rows(max(8, target_block_bytes // row_bytes))
    tm = min(tm, 8192)                        # bound the (TM,128) f32 partial
    tm = min(tm, ((m + 7) // 8) * 8)          # never exceed the row count
    tm = max(8, tm)

    min_steps = max(4, 2 * num_cores)
    if pl.cdiv(m, tm) < min_steps:
        cand = _round_rows(max(8, pl.cdiv(m, min_steps)))
        if cand * row_bytes >= min_block_bytes:
            tm = cand

    if num_cores > 1 and pl.cdiv(m, tm) % num_cores != 0:
        gran = 128 if tm > 128 else 8
        t = tm - gran
        while t >= 8 and t * row_bytes >= min_block_bytes:
            if pl.cdiv(m, t) % num_cores == 0:
                tm = t
                break
            t -= gran
    return tm


def gemp3d(x, p=4.6, eps=1e-8, emb_dim=None, row_block=None):
    """Generalized-mean pooling over (H, W) of an NCDHW tensor.

    Matches gemp3D.forward with emb_dim in (None, D):
        y = AdaptiveAvgPool3d((D, 1, 1))(clamp(x, min=eps) ** p) ** (1/p)
    Returns (N, C, D, 1, 1).  `row_block` optionally overrides the row tile
    (testing / tuning).
    """
    # TODO(synk): emb_dim not in (None, D) would need adaptive re-binning over D.
    N, C, D, H, W = x.shape
    assert emb_dim is None or emb_dim == D, \
        "only emb_dim=None / emb_dim == D supported"

    M = N * C * D
    HW = H * W
    itemsize = jnp.dtype(x.dtype).itemsize

    # Pure view (contiguous dim merge): reduction axis (HW) maps onto lanes.
    # NOTE: if HW is not a multiple of 128 (e.g. 7*7=49) lanes are partially
    # idle; free while HBM-bound, a 128/HW slowdown only in the EUP-bound
    # fractional-p regime.
    x2d = x.reshape(M, HW)

    target_bytes, min_bytes, num_cores = _generation_hints()
    if row_block is not None:
        assert row_block >= 8 and row_block % 8 == 0
        tm = min(row_block, ((M + 7) // 8) * 8)
    else:
        tm = _choose_row_tile(M, HW, itemsize, target_bytes, min_bytes,
                              num_cores)
    n_blocks = pl.cdiv(M, tm)        # ragged last block: no wrapper-side pad
    ragged = (n_blocks * tm != M)

    kernel = functools.partial(_gemp_kernel, p=float(p), eps=float(eps),
                               inv_hw=1.0 / HW,
                               total_rows=(M if ragged else None))

    if _is_small_integer(p):
        n_tr = 0
    elif _is_small_integer(2.0 * float(p)):
        n_tr = M * HW
    else:
        n_tr = 2 * M * HW
    cost = pl.CostEstimate(
        flops=4 * M * HW,
        transcendentals=n_tr + 2 * M,
        bytes_accessed=M * HW * itemsize + n_blocks * tm * itemsize,
    )

    # TODO(synk): for very large H*W (>~64K elements) a single (8, HW) block can
    # exceed the VMEM budget; that shape would need a second "arbitrary" grid
    # axis over HW with an f32 accumulator.
    out = pl.pallas_call(
        kernel,
        out_shape=jax.ShapeDtypeStruct((n_blocks, 1, tm), x.dtype),
        grid_spec=pltpu.PrefetchScalarGridSpec(
            num_scalar_prefetch=0,
            grid=(n_blocks,),
            in_specs=[pl.BlockSpec((tm, HW), lambda i: (i, 0))],
            out_specs=pl.BlockSpec((1, 1, tm), lambda i: (i, 0, 0)),
        ),
        compiler_params=pltpu.CompilerParams(
            dimension_semantics=("parallel",),
            # 32 MiB: raises v5e's 16 MiB scoped default, stays well inside
            # v7x's 64 MiB physical VMEM.  Double-buffered <=4 MiB inputs plus
            # the fused (TM,128) f32 partial leave ample headroom.
            vmem_limit_bytes=32 * 1024 * 1024,
        ),
        cost_estimate=cost,
    )(x2d)

    return out.reshape(n_blocks * tm)[:M].reshape(N, C, D, 1, 1)


def _reference(x, p=4.6, eps=1e-8):
    xf = jnp.maximum(x.astype(jnp.float32), jnp.float32(eps)) ** p
    m = jnp.mean(xf, axis=(-2, -1), keepdims=True)
    return (m ** (1.0 / p)).astype(x.dtype)


if __name__ == "__main__":
    key = jax.random.PRNGKey(0)
    N, C, D, H, W = 2, 4, 8, 16, 16
    x = jax.random.uniform(key, (N, C, D, H, W), dtype=jnp.float32,
                           minval=-0.5, maxval=1.5)

    # Fractional-p path (EUP exp/log), HW a multiple of 128.
    y = jax.block_until_ready(gemp3d(x, p=4.6, eps=1e-8, emb_dim=None))
    y_ref = _reference(x, p=4.6, eps=1e-8)
    assert y.shape == (N, C, D, 1, 1), y.shape
    assert jnp.allclose(y, y_ref, rtol=3e-4, atol=1e-6), \
        float(jnp.max(jnp.abs(y - y_ref)))

    # Integer-p fast path + odd shapes: M=15 rows (ragged block, no wrapper
    # pad) and HW=49 (non-128-multiple lane width).
    x2 = jax.random.uniform(jax.random.PRNGKey(1), (1, 3, 5, 7, 7),
                            dtype=jnp.float32, minval=-0.5, maxval=2.0)
    y2 = jax.block_until_ready(gemp3d(x2, p=3.0, eps=1e-8))
    y2_ref = _reference(x2, p=3.0, eps=1e-8)
    assert y2.shape == (1, 3, 5, 1, 1), y2.shape
    assert jnp.allclose(y2, y2_ref, rtol=3e-4, atol=1e-6), \
        float(jnp.max(jnp.abs(y2 - y2_ref)))

    # Half-integer fast path + forced multi-block ragged grid (row_block=8:
    # 2 grid steps, last block has one out-of-range row).
    y3 = jax.block_until_ready(gemp3d(x2, p=4.5, eps=1e-8, row_block=8))
    y3_ref = _reference(x2, p=4.5, eps=1e-8)
    assert y3.shape == (1, 3, 5, 1, 1), y3.shape
    assert jnp.allclose(y3, y3_ref, rtol=3e-4, atol=1e-6), \
        float(jnp.max(jnp.abs(y3 - y3_ref)))

    print("KERNEL_OK")
</pallas_src>

<mosaic_0001>
module attributes {stable_mosaic.version = 11 : i64} {
  func.func @_gemp_kernel(%arg0: i32, %arg1: memref<64x256xf32, #tpu.memory_space<vmem>>, %arg2: memref<1x1x64xf32, #tpu.memory_space<vmem>>) attributes {dimension_semantics = [#tpu.dimension_semantics<parallel>], iteration_bounds = array<i64: 1>, scalar_prefetch = 0 : i64, scratch_operands = 0 : i64, tpu.core_type = #tpu.core_type<tc>, window_params = [{transform_indices = @transform_0, window_bounds = array<i64: 64, 256>}, {transform_indices = @transform_1, window_bounds = array<i64: 1, 1, 64>}]} {
    %c0 = arith.constant 0 : index
    %c0_0 = arith.constant 0 : index
    %0 = vector.load %arg1[%c0, %c0_0] : memref<64x256xf32, #tpu.memory_space<vmem>>, vector<64x128xf32>
    %cst = arith.constant 9.99999993E-9 : f32
    %1 = vector.broadcast %cst : f32 to vector<64x128xf32>
    %2 = arith.maximumf %0, %1 : vector<64x128xf32>
    %3 = math.log %2 : vector<64x128xf32>
    %cst_1 = arith.constant 4.600000e+00 : f32
    %4 = vector.broadcast %cst_1 : f32 to vector<64x128xf32>
    %5 = arith.mulf %4, %3 : vector<64x128xf32>
    %6 = math.exp %5 : vector<64x128xf32>
    %c0_2 = arith.constant 0 : index
    %c128 = arith.constant 128 : index
    %7 = vector.load %arg1[%c0_2, %c128] : memref<64x256xf32, #tpu.memory_space<vmem>>, vector<64x128xf32>
    %cst_3 = arith.constant 9.99999993E-9 : f32
    %8 = vector.broadcast %cst_3 : f32 to vector<64x128xf32>
    %9 = arith.maximumf %7, %8 : vector<64x128xf32>
    %10 = math.log %9 : vector<64x128xf32>
    %cst_4 = arith.constant 4.600000e+00 : f32
    %11 = vector.broadcast %cst_4 : f32 to vector<64x128xf32>
    %12 = arith.mulf %11, %10 : vector<64x128xf32>
    %13 = math.exp %12 : vector<64x128xf32>
    %14 = arith.addf %6, %13 : vector<64x128xf32>
    %cst_5 = arith.constant 1.000000e+00 : f32
    %15 = vector.broadcast %cst_5 : f32 to vector<1x128xf32>
    %cst_6 = arith.constant dense<0.000000e+00> : vector<1x64xf32>
    %16 = tpu.matmul %15, %14, %cst_6 {dimension_numbers = #tpu.dot_dimension_numbers<[1], [1], [0], [0], [0, 0, 1, 0], [], []>, precision = #tpu.contract_precision<fp32>} : vector<1x128xf32>, vector<64x128xf32>, vector<1x64xf32> -> vector<1x64xf32>
    %cst_7 = arith.constant 3.906250e-03 : f32
    %17 = vector.broadcast %cst_7 : f32 to vector<1x64xf32>
    %18 = arith.mulf %16, %17 : vector<1x64xf32>
    %19 = math.log %18 : vector<1x64xf32>
    %cst_8 = arith.constant 0.217391297 : f32
    %20 = vector.broadcast %cst_8 : f32 to vector<1x64xf32>
    %21 = arith.mulf %20, %19 : vector<1x64xf32>
    %22 = math.exp %21 : vector<1x64xf32>
    %23 = vector.shape_cast %22 : vector<1x64xf32> to vector<1x1x64xf32>
    %c0_9 = arith.constant 0 : index
    %c0_10 = arith.constant 0 : index
    %c0_11 = arith.constant 0 : index
    %24 = vector.load %arg2[%c0_9, %c0_10, %c0_11] : memref<1x1x64xf32, #tpu.memory_space<vmem>>, vector<1x1x64xf32>
    tpu.vector_store %arg2[%c0_9, %c0_10, %c0_11], %23 {strides = array<i32>} : memref<1x1x64xf32, #tpu.memory_space<vmem>>, vector<1x1x64xf32>,
    return
  }
  func.func @transform_0(%arg0: i32) -> (i32, i32) {
    %c0_i32 = arith.constant 0 : i32
    %c0_i32_0 = arith.constant 0 : i32
    return %arg0, %c0_i32 : i32, i32
  }
  func.func @transform_1(%arg0: i32) -> (i32, i32, i32) {
    %c0_i32 = arith.constant 0 : i32
    %c0_i32_0 = arith.constant 0 : i32
    %c0_i32_1 = arith.constant 0 : i32
    return %arg0, %c0_i32, %c0_i32_0 : i32, i32, i32
  }
}

</mosaic_0001>

<bundles_post_ra>
// kernel: tpu_custom_call.1
= control target key start
LH: loop header
LB: loop body
LE: loop exit
PB: predicated region body
PF: predicated region fallthrough
CT: control target
= control target key end

     0   :  { %6 = vsyncpa [#allocation3], 0  ;;  %s1189_s0 = inlined_call_operand.hbm [shape: f32[64,256], index: 0, kind: input, shape index: {}]   ;;  %s1190_s1 = inlined_call_operand.hbm [shape: f32[1,1,64], index: 1, kind: output, shape index: {}]  }
   0x1   :  { %7 = vsyncpa [#allocation4], 0  ;;  %s1063_s6 = smov [#allocation2]   ;;  %s1015_s10 = scalar_lea.hbm %s1189_s0, 2048 }
   0x2   :  { %s13_s7 = sshll.u32 %s1063_s6, 4  ;;  %p1016_p0 = scmp.ne.s32.totalorder %s1189_s0, %s1015_s10  ;;  %s14_s7 = int_to_ptr.vmem [resolvable:$true] %s13_s7 }
   0x3   :  { %p1019_p1 = scmp.lt.u32.totalorder %s1015_s10, %s1189_s0 }
   0x5   :  { %p1021_p2 = pnand %p1019_p1, %p1016_p0 }
   0x7   :  { %1024 = shalt.err (!%p1021_p2)
}
   0x8   :  { %s1025_s15 = scalar_lea.vmem %s14_s7, 2048  ;;  %p1030_p4 = scmp.lt.s32.totalorder %s14_s7, %s14_s7 }
   0x9   :  { %p1026_p3 = scmp.ne.s32.totalorder %s14_s7, %s1025_s15  ;;  %p1031_p5 = scmp.lt.s32.totalorder %s1025_s15, %s1025_s15 }
   0xb   :  { %p1032_p6 = por %p1031_p5, %p1030_p4 }
   0xd   :  { %p1033_p7 = pnand %p1032_p6, %p1026_p3 }
   0xf   :  { %1036 = shalt.err (!%p1033_p7)
}
  0x10   :  { %s1064_s16 = smov 256   ;;  %s1065_s17 = smov 16  }
  0x11   :  { %19 = dma.hbm_to_vmem [thread:$0]  %s1189_s0, 2048, %s14_s7, [#allocation3], %s1064_s16, %s1064_s16, %s1065_s17  }
  0x12   :  { %1059 = dma.done.wait [#allocation3], 2048  }
  0x13   :  { %1060 = vsyncadd [#allocation3], 4294965248  ;;  %v1066_v0 = vmov 0.0|0.0   ;;  %vm1067_vm0 = vmmov 0   ;;  %v1068_v1 = vmov 0.0   ;;  %v23_v2 = vld [vmem:[#allocation2] sm:$0xff] }
  0x14   :  { %858 = vmatprep.subr.bf16.mxu1 %v1066_v0  ;;  %894 = vmatprep.subr.bf16.mxu0 %v1066_v0  ;;  %v24_v3 = vld [vmem:[#allocation2 + $0x10] sm:$0xff]  ;;  %v79_v4 = vld [vmem:[#allocation2 + $0x8] sm:$0xff]  ;;  %v31_v5 = vmax.f32 %v23_v2, 1e-08  ;;  %v80_v7 = vld [vmem:[#allocation2 + $0x18] sm:$0xff]  ;;  %s1070_s0 = smov [#allocation5]  }
  0x15   :  { %760 = vmatprep.mubr.msk.f32.mxu1 %vm1067_vm0, %v1068_v1  ;;  %817 = vmatprep.mubr.msk.f32.mxu0 %vm1067_vm0, %v1068_v1  ;;  %v32_v6 = vmax.f32 %v24_v3, 1e-08  ;;  %v25_v8 = vld [vmem:[#allocation2 + $0x20] sm:$0xff]  ;;  %v87_v9 = vmax.f32 %v79_v4, 1e-08  ;;  %v26_v11 = vld [vmem:[#allocation2 + $0x30] sm:$0xff] }
  0x16   :  { %v88_v10 = vmax.f32 %v80_v7, 1e-08  ;;  %v81_v12 = vld [vmem:[#allocation2 + $0x28] sm:$0xff]  ;;  %947 = vlog2.f32 %v31_v5  ;;  %v33_v13 = vmax.f32 %v25_v8, 1e-08  ;;  %v82_v14 = vld [vmem:[#allocation2 + $0x38] sm:$0xff] }
  0x17   :  { %949 = vlog2.f32 %v32_v6  ;;  %v34_v15 = vmax.f32 %v26_v11, 1e-08  ;;  %v27_v16 = vld [vmem:[#allocation2 + $0x40] sm:$0xff]  ;;  %v89_v17 = vmax.f32 %v81_v12, 1e-08  ;;  %v28_v18 = vld [vmem:[#allocation2 + $0x50] sm:$0xff] }
  0x18   :  { %951 = vlog2.f32 %v87_v9  ;;  %v90_v19 = vmax.f32 %v82_v14, 1e-08  ;;  %v83_v20 = vld [vmem:[#allocation2 + $0x48] sm:$0xff]  ;;  %v35_v21 = vmax.f32 %v27_v16, 1e-08  ;;  %v84_v22 = vld [vmem:[#allocation2 + $0x58] sm:$0xff] }
  0x19   :  { %953 = vlog2.f32 %v88_v10  ;;  %v36_v23 = vmax.f32 %v28_v18, 1e-08  ;;  %v29_v24 = vld [vmem:[#allocation2 + $0x60] sm:$0xff]  ;;  %v91_v25 = vmax.f32 %v83_v20, 1e-08  ;;  %v30_v26 = vld [vmem:[#allocation2 + $0x70] sm:$0xff] }
  0x1a   :  { %955 = vlog2.f32 %v33_v13  ;;  %v92_v27 = vmax.f32 %v84_v22, 1e-08  ;;  %v85_v28 = vld [vmem:[#allocation2 + $0x68] sm:$0xff]  ;;  %v37_v29 = vmax.f32 %v29_v24, 1e-08  ;;  %v86_v30 = vld [vmem:[#allocation2 + $0x78] sm:$0xff] }
  0x1b   :  { %957 = vlog2.f32 %v34_v15  ;;  %v38_v31 = vmax.f32 %v30_v26, 1e-08  ;;  %v93_v33 = vmax.f32 %v85_v28, 1e-08  ;;  %v94_v36 = vmax.f32 %v86_v30, 1e-08 }
  0x1c   :  { %959 = vlog2.f32 %v89_v17  ;;  %s681_s20 = sshll.u32 %s1070_s0, 4  ;;  %vm673_vm1 = vcmask 516096   ;;  %s682_s20 = int_to_ptr.vmem [resolvable:$true] %s681_s20 }
  0x1d   :  { %961 = vlog2.f32 %v90_v19  ;;  %s1037_s21 = scalar_lea.vmem %s682_s20, 16  ;;  %s1041_s22 = scalar_lea.vmem %s682_s20, 32 }
  0x1e   :  { %963 = vlog2.f32 %v35_v21  ;;  %p1038_p8 = scmp.ne.s32.totalorder %s682_s20, %s1037_s21  ;;  %p1042_p9 = scmp.lt.s32.totalorder %s682_s20, %s682_s20 }
  0x1f   :  { %965 = vlog2.f32 %v36_v23  ;;  %p1043_p10 = scmp.lt.s32.totalorder %s1041_s22, %s1037_s21 }
  0x20   :  { %v948_v32 = vpop.eup %947  ;;  %967 = vlog2.f32 %v91_v25 }
  0x21   :  { %v950_v34 = vpop.eup %949  ;;  %v40_v35 = vmul.f32 0.6931472, %v948_v32  ;;  %969 = vlog2.f32 %v92_v27  ;;  %p1044_p11 = por %p1043_p10, %p1042_p9 }
  0x22   :  { %v952_v37 = vpop.eup %951  ;;  %v42_v38 = vmul.f32 0.6931472, %v950_v34  ;;  %971 = vlog2.f32 %v37_v29 }
  0x23   :  { %v954_v39 = vpop.eup %953  ;;  %v55_v40 = vmul.f32 4.6, %v40_v35  ;;  %v96_v41 = vmul.f32 0.6931472, %v952_v37  ;;  %973 = vlog2.f32 %v38_v31  ;;  %p1045_p12 = pnand %p1044_p11, %p1038_p8 }
  0x24   :  { %v956_v42 = vpop.eup %955  ;;  %v56_v43 = vmul.f32 4.6, %v42_v38  ;;  %v98_v44 = vmul.f32 0.6931472, %v954_v39  ;;  %975 = vlog2.f32 %v93_v33 }
  0x25   :  { %v958_v45 = vpop.eup %957  ;;  %v63_v46 = vmul.f32 1.442695, %v55_v40  ;;  %v111_v47 = vmul.f32 4.6, %v96_v41  ;;  %v44_v48 = vmul.f32 0.6931472, %v956_v42  ;;  %977 = vlog2.f32 %v94_v36 }
  0x26   :  { %v960_v49 = vpop.eup %959  ;;  %v65_v50 = vmul.f32 1.442695, %v56_v43  ;;  %v112_v51 = vmul.f32 4.6, %v98_v44  ;;  %v46_v52 = vmul.f32 0.6931472, %v958_v45 }
  0x27   :  { %v962_v53 = vpop.eup %961  ;;  %979 = vpow2.f32 %v63_v46  ;;  %v119_v54 = vmul.f32 1.442695, %v111_v47  ;;  %v57_v55 = vmul.f32 4.6, %v44_v48  ;;  %v100_v56 = vmul.f32 0.6931472, %v960_v49 }
  0x28   :  { %v964_v57 = vpop.eup %963  ;;  %981 = vpow2.f32 %v65_v50  ;;  %v121_v58 = vmul.f32 1.442695, %v112_v51  ;;  %v58_v59 = vmul.f32 4.6, %v46_v52  ;;  %v102_v60 = vmul.f32 0.6931472, %v962_v53 }
  0x29   :  { %v966_v61 = vpop.eup %965  ;;  %983 = vpow2.f32 %v119_v54  ;;  %v67_v62 = vmul.f32 1.442695, %v57_v55  ;;  %v113_v63 = vmul.f32 4.6, %v100_v56  ;;  %v48_v2 = vmul.f32 0.6931472, %v964_v57 }
  0x2a   :  { %v968_v3 = vpop.eup %967  ;;  %985 = vpow2.f32 %v121_v58  ;;  %v69_v4 = vmul.f32 1.442695, %v58_v59  ;;  %v114_v5 = vmul.f32 4.6, %v102_v60  ;;  %v50_v6 = vmul.f32 0.6931472, %v966_v61 }
  0x2b   :  { %v970_v7 = vpop.eup %969  ;;  %987 = vpow2.f32 %v67_v62  ;;  %v123_v8 = vmul.f32 1.442695, %v113_v63  ;;  %v59_v9 = vmul.f32 4.6, %v48_v2  ;;  %v104_v10 = vmul.f32 0.6931472, %v968_v3 }
  0x2c   :  { %v972_v11 = vpop.eup %971  ;;  %989 = vpow2.f32 %v69_v4  ;;  %v125_v12 = vmul.f32 1.442695, %v114_v5  ;;  %v60_v13 = vmul.f32 4.6, %v50_v6  ;;  %v106_v14 = vmul.f32 0.6931472, %v970_v7 }
  0x2d   :  { %v974_v15 = vpop.eup %973  ;;  %991 = vpow2.f32 %v123_v8  ;;  %v71_v16 = vmul.f32 1.442695, %v59_v9  ;;  %v115_v17 = vmul.f32 4.6, %v104_v10  ;;  %v52_v18 = vmul.f32 0.6931472, %v972_v11 }
  0x2e   :  { %v976_v19 = vpop.eup %975  ;;  %993 = vpow2.f32 %v125_v12  ;;  %v73_v20 = vmul.f32 1.442695, %v60_v13  ;;  %v116_v21 = vmul.f32 4.6, %v106_v14  ;;  %v54_v22 = vmul.f32 0.6931472, %v974_v15 }
  0x2f   :  { %v978_v23 = vpop.eup %977  ;;  %995 = vpow2.f32 %v71_v16  ;;  %v127_v24 = vmul.f32 1.442695, %v115_v17  ;;  %v61_v25 = vmul.f32 4.6, %v52_v18  ;;  %v108_v26 = vmul.f32 0.6931472, %v976_v19 }
  0x30   :  { %997 = vpow2.f32 %v73_v20  ;;  %v129_v27 = vmul.f32 1.442695, %v116_v21  ;;  %v62_v28 = vmul.f32 4.6, %v54_v22  ;;  %v110_v29 = vmul.f32 0.6931472, %v978_v23 }
  0x31   :  { %v980_v30 = vpop.eup %979  ;;  %999 = vpow2.f32 %v127_v24  ;;  %v117_v31 = vmul.f32 4.6, %v108_v26  ;;  %v75_v35 = vmul.f32 1.442695, %v61_v25 }
  0x32   :  { %v982_v32 = vpop.eup %981  ;;  %1001 = vpow2.f32 %v129_v27  ;;  %v118_v33 = vmul.f32 4.6, %v110_v29  ;;  %v77_v38 = vmul.f32 1.442695, %v62_v28 }
  0x33   :  { %v984_v34 = vpop.eup %983  ;;  %v131_v41 = vmul.f32 1.442695, %v117_v31  ;;  %1003 = vpow2.f32 %v75_v35 }
  0x34   :  { %v986_v36 = vpop.eup %985  ;;  %v135_v37 = vadd.f32 %v984_v34, %v980_v30  ;;  %v133_v44 = vmul.f32 1.442695, %v118_v33  ;;  %1005 = vpow2.f32 %v77_v38 }
  0x35   :  { %v988_v39 = vpop.eup %987  ;;  %v136_v40 = vadd.f32 %v986_v36, %v982_v32  ;;  %1007 = vpow2.f32 %v131_v41 }
  0x36   :  { %v990_v42 = vpop.eup %989  ;;  %v144_v43 = vand.u32 4294901760, %v135_v37  ;;  %1009 = vpow2.f32 %v133_v44 }
  0x37   :  { %v992_v45 = vpop.eup %991  ;;  %v147_v46 = vand.u32 4294901760, %v136_v40 }
  0x38   :  { %v994_v47 = vpop.eup %993  ;;  %v137_v48 = vadd.f32 %v992_v45, %v988_v39  ;;  %v1111_v4 = vsub.f32 %v135_v37, %v144_v43 }
  0x39   :  { %v996_v49 = vpop.eup %995  ;;  %v1099_v50 = vpack.c.bf16 %v147_v46, %v144_v43  ;;  %v138_v51 = vadd.f32 %v994_v47, %v990_v42  ;;  %v1113_v5 = vsub.f32 %v136_v40, %v147_v46 }
  0x3a   :  { %v998_v52 = vpop.eup %997  ;;  %v150_v54 = vand.u32 4294901760, %v137_v48  ;;  %v224_v11 = vand.u32 4294901760, %v1111_v4 }
  0x3b   :  { %v1000_v53 = vpop.eup %999  ;;  %860 = vmatpush3.bf16.xpose.msra.mxu1 %v1099_v50  ;;  %896 = vmatpush3.bf16.xpose.msra.mxu0 %v1099_v50  ;;  %v153_v55 = vand.u32 4294901760, %v138_v51  ;;  %v231_v12 = vand.u32 4294901760, %v1113_v5 }
  0x3c   :  { %v1002_v56 = vpop.eup %1001  ;;  %861 = vmatprep.subr.bf16.mxu1 %v1066_v0  ;;  %897 = vmatprep.subr.bf16.mxu0 %v1066_v0  ;;  %v139_v58 = vadd.f32 %v1000_v53, %v996_v49  ;;  %v1123_v13 = vsub.f32 %v137_v48, %v150_v54  ;;  %v225_v16 = vsub.f32 %v1111_v4, %v224_v11 }
  0x3d   :  { %v1105_v57 = vpack.c.bf16 %v153_v55, %v150_v54  ;;  %v140_v59 = vadd.f32 %v1002_v56, %v998_v52  ;;  %v1004_v60 = vpop.eup %1003  ;;  %v1125_v14 = vsub.f32 %v138_v51, %v153_v55  ;;  %v232_v17 = vsub.f32 %v1113_v5, %v231_v12 }
  0x3e   :  { %v1006_v61 = vpop.eup %1005  ;;  %v156_v63 = vand.u32 4294901760, %v139_v58  ;;  %v226_v18 = vand.u32 4294901760, %v225_v16  ;;  %v238_v20 = vand.u32 4294901760, %v1123_v13  ;;  %v907_v23 = vpack.c.bf16 %v231_v12, %v224_v11 }
  0x3f   :  { %v1008_v62 = vpop.eup %1007  ;;  %v159_v2 = vand.u32 4294901760, %v140_v59  ;;  %v233_v19 = vand.u32 4294901760, %v232_v17  ;;  %v245_v21 = vand.u32 4294901760, %v1125_v14  ;;  %v883_v51 = vpack.c.bf16 %v1113_v5, %v1111_v4 }
  0x40   :  { %v1010_v3 = vpop.eup %1009  ;;  %v141_v7 = vadd.f32 %v1008_v62, %v1004_v60  ;;  %v1137_v22 = vsub.f32 %v139_v58, %v156_v63  ;;  %v239_v26 = vsub.f32 %v1123_v13, %v238_v20  ;;  %v1069_v52 = vmov 1.0  }
  0x41   :  { %v1115_v6 = vpack.c.bf16 %v159_v2, %v156_v63  ;;  %v142_v8 = vadd.f32 %v1010_v3, %v1006_v61  ;;  %v258_v24 = vsub.f32 %v140_v59, %v159_v2  ;;  %v871_v25 = vpack.c.bf16 %v233_v19, %v226_v18 }
  0x42   :  { %v162_v9 = vand.u32 4294901760, %v141_v7  ;;  %v246_v27 = vsub.f32 %v1125_v14, %v245_v21  ;;  %v240_v28 = vand.u32 4294901760, %v239_v26  ;;  %v252_v30 = vand.u32 4294901760, %v1137_v22 }
  0x43   :  { %863 = vmatpush3.bf16.xpose.msra.mxu1 %v1105_v57  ;;  %899 = vmatpush3.bf16.xpose.msra.mxu0 %v1105_v57  ;;  %v165_v10 = vand.u32 4294901760, %v142_v8  ;;  %v259_v31 = vand.u32 4294901760, %v258_v24  ;;  %v910_v33 = vpack.c.bf16 %v245_v21, %v238_v20  ;;  %v886_v53 = vpack.c.bf16 %v1125_v14, %v1123_v13 }
  0x44   :  { %864 = vmatprep.subr.bf16.mxu1 %v1066_v0  ;;  %900 = vmatprep.subr.bf16.mxu0 %v1066_v0  ;;  %v247_v29 = vand.u32 4294901760, %v246_v27  ;;  %v265_v32 = vsub.f32 %v141_v7, %v162_v9  ;;  %v253_v36 = vsub.f32 %v1137_v22, %v252_v30 }
  0x45   :  { %v1127_v15 = vpack.c.bf16 %v165_v10, %v162_v9  ;;  %v272_v34 = vsub.f32 %v142_v8, %v165_v10  ;;  %v260_v37 = vsub.f32 %v258_v24, %v259_v31  ;;  %v913_v43 = vpack.c.bf16 %v259_v31, %v252_v30 }
  0x46   :  { %v874_v35 = vpack.c.bf16 %v247_v29, %v240_v28  ;;  %v254_v38 = vand.u32 4294901760, %v253_v36  ;;  %v266_v40 = vand.u32 4294901760, %v265_v32 }
  0x47   :  { %v261_v39 = vand.u32 4294901760, %v260_v37  ;;  %v273_v41 = vand.u32 4294901760, %v272_v34  ;;  %v892_v54 = vpack.c.bf16 %v272_v34, %v265_v32 }
  0x48   :  { %v267_v44 = vsub.f32 %v265_v32, %v266_v40 }
  0x49   :  { %v877_v42 = vpack.c.bf16 %v261_v39, %v254_v38  ;;  %v274_v45 = vsub.f32 %v272_v34, %v273_v41  ;;  %v916_v49 = vpack.c.bf16 %v273_v41, %v266_v40 }
  0x4a   :  { %v268_v46 = vand.u32 4294901760, %v267_v44 }
  0x4b   :  { %866 = vmatpush3.bf16.xpose.msra.mxu1 %v1115_v6  ;;  %902 = vmatpush3.bf16.xpose.msra.mxu0 %v1115_v6  ;;  %v275_v47 = vand.u32 4294901760, %v274_v45 }
  0x4c   :  { %867 = vmatprep.subr.bf16.mxu1 %v1066_v0  ;;  %903 = vmatprep.subr.bf16.mxu0 %v1066_v0 }
  0x4d   :  { %v880_v48 = vpack.c.bf16 %v275_v47, %v268_v46 }
  0x53   :  { %869 = vmatpush3.bf16.xpose.msra.mxu1 %v1127_v15  ;;  %905 = vmatpush3.bf16.xpose.msra.mxu0 %v1127_v15 }
  0x54   :  { %870 = vmatprep.subr.bf16.mxu1 %v1066_v0  ;;  %906 = vmatprep.subr.bf16.mxu0 %v1066_v0 }
  0x5a   :  { %761 = vmatmul.mubr.f32.vlgmr.msra.gmra.mrb[0].mxu1 %v1068_v1  ;;  %818 = vmatmul.mubr.f32.vlgmr.msra.gmra.mrb[0].mxu0 %v1068_v1 }
  0x5b   :  { %872 = vmatpush3.bf16.xpose.msra.mxu1 %v871_v25  ;;  %908 = vmatpush3.bf16.xpose.msra.mxu0 %v907_v23 }
  0x5c   :  { %873 = vmatprep.subr.bf16.mxu1 %v1066_v0  ;;  %909 = vmatprep.subr.bf16.mxu0 %v1066_v0 }
  0x5d   :  { %779 = vmatprep.mubr.msk.f32.mxu1 %vm1067_vm0, %v1068_v1  ;;  %836 = vmatprep.mubr.msk.f32.mxu0 %vm1067_vm0, %v1068_v1 }
  0x63   :  { %875 = vmatpush3.bf16.xpose.msra.mxu1 %v874_v35  ;;  %911 = vmatpush3.bf16.xpose.msra.mxu0 %v910_v33 }
  0x64   :  { %876 = vmatprep.subr.bf16.mxu1 %v1066_v0  ;;  %912 = vmatprep.subr.bf16.mxu0 %v1066_v0 }
  0x6b   :  { %878 = vmatpush3.bf16.xpose.msra.mxu1 %v877_v42  ;;  %914 = vmatpush3.bf16.xpose.msra.mxu0 %v913_v43 }
  0x6c   :  { %879 = vmatprep.subr.bf16.mxu1 %v1066_v0  ;;  %915 = vmatprep.subr.bf16.mxu0 %v1066_v0 }
  0x73   :  { %881 = vmatpush3.bf16.xpose.msra.mxu1 %v880_v48  ;;  %917 = vmatpush3.bf16.xpose.msra.mxu0 %v916_v49 }
  0x74   :  { %882 = vmatprep.subr.bf16.mxu1 %v1066_v0  ;;  %918 = vmatprep.subr.bf16.mxu0 %v1066_v0 }
  0x7a   :  { %780 = vmatmul.mubr.f32.vlgmr.msra.gmra.mrb[0].mxu1 %v1069_v52  ;;  %837 = vmatmul.mubr.f32.vlgmr.msra.gmra.mrb[0].mxu0 %v1069_v52 }
  0x7b   :  { %884 = vmatpush3.bf16.xpose.msra.mxu1 %v883_v51  ;;  %920 = vmatpush3.bf16.xpose.msra.mxu0 %v1099_v50  ;;  %v889_v50 = vpack.c.bf16 %v258_v24, %v1137_v22 }
  0x7c   :  { %885 = vmatprep.subr.bf16.mxu1 %v1066_v0  ;;  %921 = vmatprep.subr.bf16.mxu0 %v1066_v0 }
  0x7d   :  { %798 = vmatprep.mubr.msk.f32.mxu1 %vm1067_vm0, %v1068_v1  ;;  %855 = vmatprep.mubr.msk.f32.mxu0 %vm1067_vm0, %v1068_v1 }
  0x83   :  { %887 = vmatpush3.bf16.xpose.msra.mxu1 %v886_v53  ;;  %923 = vmatpush3.bf16.xpose.msra.mxu0 %v1105_v57 }
  0x84   :  { %888 = vmatprep.subr.bf16.mxu1 %v1066_v0  ;;  %924 = vmatprep.subr.bf16.mxu0 %v1066_v0 }
  0x8b   :  { %890 = vmatpush3.bf16.xpose.msra.mxu1 %v889_v50  ;;  %926 = vmatpush3.bf16.xpose.msra.mxu0 %v1115_v6 }
  0x8c   :  { %891 = vmatprep.subr.bf16.mxu1 %v1066_v0  ;;  %927 = vmatprep.subr.bf16.mxu0 %v1066_v0 }
  0x93   :  { %893 = vmatpush3.bf16.xpose.msra.mxu1 %v892_v54  ;;  %929 = vmatpush3.bf16.xpose.msra.mxu0 %v1127_v15 }
  0x9a   :  { %799 = vmatmul.mubr.f32.vlgmr.msra.gmra.mrb[0].mxu1 %v1068_v1  ;;  %856 = vmatmul.mubr.f32.vlgmr.msra.gmra.mrb[0].mxu0 %v1069_v52 }
 0x16d   :  { %v413_v55 = vpop.f32.mrb[0].mxu1  ;;  %v663_v56 = vpop.f32.mrb[0].mxu0 }
 0x16e   :  { %v930_v57 = vadd.f32 %v663_v56, %v413_v55  ;;  %v800_v58 = vpop.f32.mrb[1].mxu1  ;;  %v857_v59 = vpop.f32.mrb[1].mxu0 }
 0x170   :  { %v667_v60 = vmul.f32 0.00390625, %v930_v57 }
 0x172   :  { %1011 = vlog2.f32 %v667_v60 }
 0x17c   :  { %v1012_v61 = vpop.eup %1011 }
 0x17d   :  { %v669_v62 = vmul.f32 0.6931472, %v1012_v61 }
 0x17f   :  { %v670_v63 = vmul.f32 0.2173913, %v669_v62 }
 0x181   :  { %v671_v2 = vmul.f32 1.442695, %v670_v63 }
 0x183   :  { %1013 = vpow2.f32 %v671_v2 }
 0x18d   :  { %v1014_v0 = vpop.eup %1013 }
 0x18e   :  { %674 = vst.msk [vmem:[#allocation5] sm:$0x1] %vm673_vm1, %v1014_v0 }
 0x18f   :  { %1048 = shalt.err (!%p1045_p12)
}
 0x190   :  { %s1049_s25 = scalar_lea.hbm %s1190_s1, 16 }
 0x191   :  { %p1050_p13 = scmp.ne.s32.totalorder %s1190_s1, %s1049_s25  ;;  %p1053_p0 = scmp.lt.u32.totalorder %s1049_s25, %s1190_s1 }
 0x193   :  { %p1055_p1 = pnand %p1053_p0, %p1050_p13 }
 0x195   :  { %1058 = shalt.err (!%p1055_p1)
}
 0x196   :  { %684 = dma.vmem_to_hbm [thread:$0]  %s682_s20, 16, %s1190_s1, [#allocation4]  }
 0x197   :  { %1061 = dma.done.wait [#allocation4], 16  }
 0x198   :  { %1062 = vsyncadd [#allocation4], 4294967280 }
 0x199   :  { %688 = vsyncpa [#allocation3], 1 }
 0x19a   :  { %689 = vsyncpa [#allocation4], 1 }

</bundles_post_ra>
